<compile_context>
chip_gen: v6e
topology: v6e:2x2x1
jax: 0.10.0
libtpu: 0.0.40
codegen_flags: <defaults>
</compile_context>

<pallas_src>
import math

import jax
import jax.numpy as jnp
from jax.experimental import pallas as pl
from jax.experimental.pallas import tpu as pltpu


def _bcast_add_kernel(x_ref, img_ref, o_ref):
    # x_ref: (TN, W), img_ref: (1, W) VMEM-resident; broadcast add over rows.
    # The add promotes to the wider dtype in-kernel (PyTorch-style promotion).
    o_ref[...] = (x_ref[...] + img_ref[...]).astype(o_ref.dtype)


_TINY_BYTES = 512 << 10        # below this: single full-array VMEM block, no grid
_TARGET_TILE_BYTES = 4 << 20   # ~4 MiB x tiles: amortize per-grid-step overhead
_ROW_ALIGN = 32                # whole packed sublane groups for bf16/int8/fp8
_VMEM_LIMIT_BYTES = 48 << 20   # safe cap on v7x (64 MiB phys) and v5e/v6e (128 MiB)


def add_test_img(x: jax.Array, test_img: jax.Array) -> jax.Array:
    """Computes x + test_img (test_img broadcast over batch) with a Pallas TPU kernel."""
    assert x.shape[1:] == test_img.shape[1:] and test_img.shape[0] == 1
    n = x.shape[0]
    f = math.prod(x.shape[1:])                       # C*H*W (=192 for the spec)
    out_dtype = jnp.promote_types(x.dtype, test_img.dtype)

    # Row-fold factor R: pack R batch samples per row so the lane dim (R*f) is a
    # multiple of 128 (unmasked stores, no lane padding, contiguous DMA rows).
    r = 1
    for cand in (16, 8, 4, 2):
        if n % cand == 0 and (cand * f) % 128 == 0:
            r = cand
            break
    rows, width = n // r, r * f

    x2 = x.reshape(rows, width)                       # free metadata reshape
    img2 = jnp.tile(test_img.reshape(1, f), (1, r))   # (1, width), tiny, wrapper-side

    in_itemsize = jnp.dtype(x.dtype).itemsize
    out_itemsize = jnp.dtype(out_dtype).itemsize
    bytes_per_row = width * max(in_itemsize, out_itemsize)
    total_bytes = rows * bytes_per_row

    if total_bytes <= _TINY_BYTES or rows < 2 * _ROW_ALIGN:
        # Tiny/short case: one full-array VMEM block; no grid, no index maps.
        out2 = pl.pallas_call(
            _bcast_add_kernel,
            out_shape=jax.ShapeDtypeStruct((rows, width), out_dtype),
        )(x2, img2)
    else:
        # Large batch: ~4 MiB row tiles, image block kept VMEM-resident via a
        # constant index_map (loaded once, never re-DMA'd), batch axis "parallel"
        # so v7x's two TensorCores split it. Grid kept >= 2 so neither core idles.
        tn = _TARGET_TILE_BYTES // bytes_per_row
        tn = min(tn, rows // 2)                       # at least 2 grid steps
        tn = max(_ROW_ALIGN, (tn // _ROW_ALIGN) * _ROW_ALIGN)
        out2 = pl.pallas_call(
            _bcast_add_kernel,
            out_shape=jax.ShapeDtypeStruct((rows, width), out_dtype),
            grid=(pl.cdiv(rows, tn),),
            in_specs=[
                pl.BlockSpec((tn, width), lambda i: (i, 0)),
                pl.BlockSpec((1, width), lambda i: (0, 0)),   # constant -> loaded once
            ],
            out_specs=pl.BlockSpec((tn, width), lambda i: (i, 0)),
            compiler_params=pltpu.CompilerParams(
                dimension_semantics=("parallel",),
                vmem_limit_bytes=_VMEM_LIMIT_BYTES,
            ),
        )(x2, img2)

    return out2.reshape((n,) + x.shape[1:])


if __name__ == "__main__":
    key = jax.random.PRNGKey(0)
    k_img, k_x, k_big = jax.random.split(key, 3)

    # Deterministic stand-in for `test_img = torch.rand(1, 3, 8, 8)`
    test_img = jax.random.uniform(k_img, (1, 3, 8, 8), dtype=jnp.float32)

    # Small case consistent with the forward: batch=2 (tiny single-block path).
    x_small = jax.random.uniform(k_x, (2, 3, 8, 8), dtype=jnp.float32)
    out_small = add_test_img(x_small, test_img)
    jax.block_until_ready(out_small)
    ref_small = x_small + test_img
    assert out_small.shape == (2, 3, 8, 8)
    assert out_small.dtype == ref_small.dtype
    assert jnp.allclose(out_small, ref_small, atol=1e-6), "small-batch mismatch"

    # Larger batch to exercise the row-folded, tiled (grid) path.
    x_big = jax.random.uniform(k_big, (2048, 3, 8, 8), dtype=jnp.float32)
    out_big = add_test_img(x_big, test_img)
    jax.block_until_ready(out_big)
    ref_big = x_big + test_img
    assert out_big.shape == (2048, 3, 8, 8)
    assert jnp.allclose(out_big, ref_big, atol=1e-6), "large-batch mismatch"

    print("KERNEL_OK")
</pallas_src>

<mosaic_0001>
module attributes {stable_mosaic.version = 11 : i64} {
  func.func @_bcast_add_kernel(%arg0: memref<1x384xf32, #tpu.memory_space<vmem>>, %arg1: memref<1x384xf32, #tpu.memory_space<vmem>>, %arg2: memref<1x384xf32, #tpu.memory_space<vmem>>) attributes {dimension_semantics = [], scalar_prefetch = 0 : i64, scratch_operands = 0 : i64, tpu.core_type = #tpu.core_type<tc>} {
    %c0 = arith.constant 0 : index
    %c0_0 = arith.constant 0 : index
    %0 = vector.load %arg0[%c0, %c0_0] : memref<1x384xf32, #tpu.memory_space<vmem>>, vector<1x384xf32>
    %c0_1 = arith.constant 0 : index
    %c0_2 = arith.constant 0 : index
    %1 = vector.load %arg1[%c0_1, %c0_2] : memref<1x384xf32, #tpu.memory_space<vmem>>, vector<1x384xf32>
    %2 = arith.addf %0, %1 : vector<1x384xf32>
    %c0_3 = arith.constant 0 : index
    %c0_4 = arith.constant 0 : index
    %3 = vector.load %arg2[%c0_3, %c0_4] : memref<1x384xf32, #tpu.memory_space<vmem>>, vector<1x384xf32>
    tpu.vector_store %arg2[%c0_3, %c0_4], %2 {strides = array<i32>} : memref<1x384xf32, #tpu.memory_space<vmem>>, vector<1x384xf32>,
    return
  }
}

</mosaic_0001>

<bundles_post_ra>
// kernel: tpu_custom_call.1
= control target key start
LH: loop header
LB: loop body
LE: loop exit
PB: predicated region body
PF: predicated region fallthrough
CT: control target
= control target key end

     0   :  { %7 = vsyncpa [#allocation3], 0  ;;  %s156_s0 = inlined_call_operand.hbm [shape: f32[1,384], index: 0, kind: input, shape index: {}]   ;;  %s157_s1 = inlined_call_operand.hbm [shape: f32[1,384], index: 1, kind: input, shape index: {}]   ;;  %s158_s2 = inlined_call_operand.hbm [shape: f32[1,384], index: 2, kind: output, shape index: {}]  }
   0x1   :  { %8 = vsyncpa [#allocation6], 0 }
   0x2   :  { %9 = vsyncpa [#allocation4], 0  ;;  %s129_s9 = smov [#allocation2]   ;;  %s130_s11 = smov [#allocation5]  }
   0x3   :  { %s16_s10 = sshll.u32 %s129_s9, 4  ;;  %s26_s12 = sshll.u32 %s130_s11, 4  ;;  %s17_s10 = int_to_ptr.vmem [resolvable:$true] %s16_s10  ;;  %s27_s12 = int_to_ptr.vmem [resolvable:$true] %s26_s12 }
   0x4   :  { %s71_s13 = scalar_lea.vmem %s17_s10, 48  ;;  %s75_s14 = scalar_lea.vmem %s17_s10, 64 }
   0x5   :  { %p72_p0 = scmp.ne.s32.totalorder %s17_s10, %s71_s13  ;;  %p76_p1 = scmp.lt.s32.totalorder %s17_s10, %s17_s10 }
   0x6   :  { %p77_p2 = scmp.lt.s32.totalorder %s75_s14, %s71_s13 }
   0x8   :  { %p78_p3 = por %p77_p2, %p76_p1 }
   0xa   :  { %p79_p4 = pnand %p78_p3, %p72_p0 }
   0xc   :  { %82 = shalt.err (!%p79_p4)
}
   0xd   :  { %19 = dma.hbm_to_vmem [thread:$0]  %s156_s0, 48, %s17_s10, [#allocation3]  }
   0xe   :  { %s91_s17 = scalar_lea.vmem %s27_s12, 48  ;;  %s95_s18 = scalar_lea.vmem %s27_s12, 64 }
   0xf   :  { %p92_p5 = scmp.ne.s32.totalorder %s27_s12, %s91_s17  ;;  %p96_p6 = scmp.lt.s32.totalorder %s27_s12, %s27_s12 }
  0x10   :  { %p97_p7 = scmp.lt.s32.totalorder %s95_s18, %s91_s17 }
  0x12   :  { %p98_p8 = por %p97_p7, %p96_p6 }
  0x14   :  { %p99_p9 = pnand %p98_p8, %p92_p5 }
  0x16   :  { %102 = shalt.err (!%p99_p9)
}
  0x17   :  { %29 = dma.hbm_to_vmem [thread:$0]  %s157_s1, 48, %s27_s12, [#allocation6]  }
  0x18   :  { %123 = dma.done.wait [#allocation3], 48  }
  0x19   :  { %124 = vsyncadd [#allocation3], 4294967248 }
  0x1a   :  { %125 = dma.done.wait [#allocation6], 48  }
  0x1b   :  { %126 = vsyncadd [#allocation6], 4294967248  ;;  %v39_v0 = vlaneseq  ;;  %s131_s21 = smov [#allocation7]   ;;  %v36_v1 = vld [vmem:[#allocation2] sm:$0x7] }
  0x1c   :  { %s50_s22 = sshll.u32 %s131_s21, 4  ;;  %v37_v2 = vld [vmem:[#allocation5] sm:$0x7]  ;;  %s51_s22 = int_to_ptr.vmem [resolvable:$true] %s50_s22 }
  0x1d   :  { %vm41_vm0 = vcmp.lt.s32.totalorder %v39_v0, 384  ;;  %v38_v3 = vadd.f32 %v37_v2, %v36_v1  ;;  %s103_s0 = scalar_lea.vmem %s51_s22, 48  ;;  %s107_s23 = scalar_lea.vmem %s51_s22, 64 }
  0x1e   :  { %p104_p10 = scmp.ne.s32.totalorder %s51_s22, %s103_s0  ;;  %p108_p11 = scmp.lt.s32.totalorder %s51_s22, %s51_s22 }
  0x1f   :  { %43 = vst.msk [vmem:[#allocation7] sm:$0x7] %vm41_vm0, %v38_v3  ;;  %p109_p12 = scmp.lt.s32.totalorder %s107_s23, %s103_s0 }
  0x21   :  { %p110_p13 = por %p109_p12, %p108_p11 }
  0x23   :  { %p111_p0 = pnand %p110_p13, %p104_p10 }
  0x25   :  { %114 = shalt.err (!%p111_p0)
}
  0x26   :  { %53 = dma.vmem_to_hbm [thread:$0]  %s51_s22, 48, %s158_s2, [#allocation4]  }
  0x27   :  { %127 = dma.done.wait [#allocation4], 48  }
  0x28   :  { %128 = vsyncadd [#allocation4], 4294967248 }
  0x29   :  { %57 = vsyncpa [#allocation3], 1 }
  0x2a   :  { %58 = vsyncpa [#allocation6], 1 }
  0x2b   :  { %59 = vsyncpa [#allocation4], 1 }

</bundles_post_ra>
